<compile_context>
chip_gen: v5e
topology: v5e:2x2
jax: 0.10.0
libtpu: 0.0.40
codegen_flags: <defaults>
</compile_context>

<pallas_src>
from functools import partial

import jax
import jax.numpy as jnp
from jax import lax
from jax.experimental import pallas as pl
from jax.experimental.pallas import tpu as pltpu


def decoder_kernel(x_ref, h0_ref, c0_ref, wih_ref, whh_ref, b_ref,
                   wout_ref, bout_ref, out_ref):
    T = x_ref.shape[0]
    H = h0_ref.shape[1]

    # ---- prologue: input projection for all timesteps (one MXU matmul) ----
    # xg[t] = x[t] @ W_ih_cat + (b_ih + b_hh)  -> (T, 4H), register-resident
    # (T=8, 4H=128 is exactly one f32 vreg at the toy shapes).
    xg = (jnp.dot(x_ref[...], wih_ref[...],
                  preferred_element_type=jnp.float32) + b_ref[...])

    # Hoist recurrent weights into vregs once (not re-loaded per step).
    whh = whh_ref[...]                                     # (H, 4H)

    h = h0_ref[...]                                        # (1, H)
    c = c0_ref[...]                                        # (1, H)
    hs = []
    # T is small & static -> static Python unroll; (h, c) and the h-history
    # stay in vregs, no VMEM traffic on the serial recurrence chain.
    for t in range(T):
        # Single fused matvec on the serial critical path.
        pre = xg[t:t + 1, :] + jnp.dot(
            h, whh, preferred_element_type=jnp.float32)    # (1, 4H)
        # One EUP push: g-gate columns were pre-scaled by 2 at pack time,
        # so tanh(z_g) == 2*sigmoid(2*z_g) - 1 (the fma is free VPU filler).
        sig = jax.nn.sigmoid(pre)
        # NOTE: 32-lane-offset gate slices; if the Mosaic dump shows VALU
        # select/rotate chains here, repack with pltpu.roll onto the XLU slot.
        i_g = sig[:, 0 * H:1 * H]
        f_g = sig[:, 1 * H:2 * H]
        g_g = 2.0 * sig[:, 2 * H:3 * H] - 1.0
        o_g = sig[:, 3 * H:4 * H]
        c = f_g * c + i_g * g_g
        h = o_g * jnp.tanh(c)                              # second EUP push (kept)
        hs.append(h)

    hall = jnp.concatenate(hs, axis=0)                     # (T, H), register-resident

    # ---- epilogue: one (T,H)x(H,Vp) matmul, single lane-dense output store ----
    out_ref[...] = (jnp.dot(hall, wout_ref[...],
                            preferred_element_type=jnp.float32) + bout_ref[...])


def _round_up(n, m):
    return (n + m - 1) // m * m


def pack_decoder_weights(wih, whh, b, wout, bout):
    """One-time weight preparation (outside the per-call hot path).

    wih:(4,I,H) whh:(4,H,H) b:(4,1,H) in PyTorch gate order (i,f,g,o);
    returns lane-dense fused-gate weights with the g-gate columns pre-scaled
    by 2 (for the tanh == 2*sigmoid(2x)-1 identity) and the vocab projection
    padded to a multiple of 128 lanes.
    """
    gate_scale = (1.0, 1.0, 2.0, 1.0)        # scale g so one sigmoid covers all gates
    wih_cat = jnp.concatenate([wih[g] * gate_scale[g] for g in range(4)], axis=1)
    whh_cat = jnp.concatenate([whh[g] * gate_scale[g] for g in range(4)], axis=1)
    b_cat = jnp.concatenate([b[g] * gate_scale[g] for g in range(4)], axis=1)

    V = wout.shape[1]
    Vp = _round_up(V, 128)
    wout_p = jnp.pad(wout, ((0, 0), (0, Vp - V)))
    bout_p = jnp.pad(bout, ((0, 0), (0, Vp - V)))
    return wih_cat, whh_cat, b_cat, wout_p, bout_p


@partial(jax.jit, static_argnames=("vocab_size",))
def decoder_forward(x, h0, c0, wih_cat, whh_cat, b_cat, wout_p, bout_p, *, vocab_size):
    """x:(T,I) h0,c0:(1,H) wih_cat:(I,4H) whh_cat:(H,4H) b_cat:(1,4H)
    wout_p:(H,Vp) bout_p:(1,Vp).  Returns (T, vocab_size) logits."""
    T = x.shape[0]
    Vp = wout_p.shape[1]

    vmem = pl.BlockSpec(memory_space=pltpu.MemorySpace.VMEM)
    out = pl.pallas_call(
        decoder_kernel,
        out_shape=jax.ShapeDtypeStruct((T, Vp), jnp.float32),
        in_specs=[vmem] * 8,
        out_specs=vmem,
        # TODO(synk): at realistic sizes (H=512, V~32k) the deferred vocab
        # projection must be tiled over V with a grid ("parallel" V axis,
        # bf16 wout on v6e/v7x) and v5e needs vmem_limit_bytes raised; the
        # whole-weights-in-VMEM path is only valid at these toy shapes.
        # TODO(synk): if the workload has >1 sentence, add a batch dim B<=8
        # (carry (B,H) h/c) to fill the f32 sublanes instead of squeezing it.
    )(x, h0, c0, wih_cat, whh_cat, b_cat, wout_p, bout_p)
    return out[:, :vocab_size]


def reference_forward(x, h0, c0, wih, whh, b, wout, bout):
    """Pure-JAX reference implementing the same PyTorch LSTM + Linear math."""
    def step(carry, x_t):
        h, c = carry
        x_t = x_t[None, :]
        pre = [x_t @ wih[g] + h @ whh[g] + b[g] for g in range(4)]
        i_g = jax.nn.sigmoid(pre[0])
        f_g = jax.nn.sigmoid(pre[1])
        g_g = jnp.tanh(pre[2])
        o_g = jax.nn.sigmoid(pre[3])
        c = f_g * c + i_g * g_g
        h = o_g * jnp.tanh(c)
        logits = h @ wout + bout
        return (h, c), logits[0]
    _, out = lax.scan(step, (h0, c0), x)
    return out


if __name__ == "__main__":
    # Small synthetic configuration (deterministic).
    V = 32     # vocab.words_count
    I = 16     # input_size (embedding dim)
    H = 32     # hidden_size
    T = 8      # len(output_sentence)
    START_ID = 0
    END_ID = 1  # unused on the teacher-forcing path (no early break)

    key = jax.random.PRNGKey(0)
    keys = jax.random.split(key, 10)

    # Parameters (deterministic init; shapes follow Decoder.__init__).
    emb = jax.random.normal(keys[0], (V, I), jnp.float32) * 0.1     # nn.Embedding(V, I)
    wih = jax.random.normal(keys[1], (4, I, H), jnp.float32) * 0.1  # LSTM W_ih^T per gate
    whh = jax.random.normal(keys[2], (4, H, H), jnp.float32) * 0.1  # LSTM W_hh^T per gate
    b_ih = jax.random.normal(keys[3], (4, 1, H), jnp.float32) * 0.1
    b_hh = jax.random.normal(keys[4], (4, 1, H), jnp.float32) * 0.1
    b = b_ih + b_hh
    wout = jax.random.normal(keys[5], (H, V), jnp.float32) * 0.1    # Linear(H, V) weight^T
    bout = jax.random.normal(keys[6], (1, V), jnp.float32) * 0.1

    # Inputs: initial hidden state and the teacher-forcing target sentence.
    h0 = jax.random.normal(keys[7], (1, H), jnp.float32)
    c0 = jax.random.normal(keys[8], (1, H), jnp.float32)
    output_sentence = jax.random.randint(keys[9], (T,), 2, V, jnp.int32)

    # Glue: embedding lookups (decoder_input sequence). Step 0 uses the START
    # token embedding, step i>0 uses embedded_output[i-1] (teacher forcing).
    tok_ids = jnp.concatenate([jnp.array([START_ID], jnp.int32),
                               output_sentence[:-1]])
    x = emb[tok_ids]                                  # (T, I)

    # One-time weight packing (kept out of the per-call hot path).
    packed = pack_decoder_weights(wih, whh, b, wout, bout)
    packed = jax.block_until_ready(packed)

    out = decoder_forward(x, h0, c0, *packed, vocab_size=V)
    out = jax.block_until_ready(out)

    ref = reference_forward(x, h0, c0, wih, whh, b, wout, bout)
    assert out.shape == (T, V)
    assert jnp.allclose(out, ref, rtol=1e-4, atol=1e-4), "mismatch vs JAX reference"

    # TODO(synk): greedy decode (argmax + early break on END) and _beam_search are
    # data-dependent host-side control flow / sorting and are not expressed in-kernel.
    print("KERNEL_OK")
</pallas_src>

<mosaic_0001>
module attributes {stable_mosaic.version = 11 : i64} {
  func.func @decoder_kernel(%arg0: memref<8x16xf32, #tpu.memory_space<vmem>>, %arg1: memref<1x32xf32, #tpu.memory_space<vmem>>, %arg2: memref<1x32xf32, #tpu.memory_space<vmem>>, %arg3: memref<16x128xf32, #tpu.memory_space<vmem>>, %arg4: memref<32x128xf32, #tpu.memory_space<vmem>>, %arg5: memref<1x128xf32, #tpu.memory_space<vmem>>, %arg6: memref<32x128xf32, #tpu.memory_space<vmem>>, %arg7: memref<1x128xf32, #tpu.memory_space<vmem>>, %arg8: memref<8x128xf32, #tpu.memory_space<vmem>>) attributes {dimension_semantics = [], scalar_prefetch = 0 : i64, scratch_operands = 0 : i64, tpu.core_type = #tpu.core_type<tc>} {
    %c0 = arith.constant 0 : index
    %c0_0 = arith.constant 0 : index
    %0 = vector.load %arg0[%c0, %c0_0] : memref<8x16xf32, #tpu.memory_space<vmem>>, vector<8x16xf32>
    %c0_1 = arith.constant 0 : index
    %c0_2 = arith.constant 0 : index
    %1 = vector.load %arg3[%c0_1, %c0_2] : memref<16x128xf32, #tpu.memory_space<vmem>>, vector<16x128xf32>
    %cst = arith.constant dense<0.000000e+00> : vector<8x128xf32>
    %2 = tpu.matmul %0, %1, %cst {dimension_numbers = #tpu.dot_dimension_numbers<[1], [0], [0], [1], [0, 0, 1, 1], [], []>} : vector<8x16xf32>, vector<16x128xf32>, vector<8x128xf32> -> vector<8x128xf32>
    %c0_3 = arith.constant 0 : index
    %c0_4 = arith.constant 0 : index
    %3 = vector.load %arg5[%c0_3, %c0_4] : memref<1x128xf32, #tpu.memory_space<vmem>>, vector<1x128xf32>
    %4 = vector.broadcast %3 : vector<1x128xf32> to vector<8x128xf32>
    %5 = arith.addf %2, %4 : vector<8x128xf32>
    %c0_5 = arith.constant 0 : index
    %c0_6 = arith.constant 0 : index
    %6 = vector.load %arg4[%c0_5, %c0_6] : memref<32x128xf32, #tpu.memory_space<vmem>>, vector<32x128xf32>
    %c0_7 = arith.constant 0 : index
    %c0_8 = arith.constant 0 : index
    %7 = vector.load %arg1[%c0_7, %c0_8] : memref<1x32xf32, #tpu.memory_space<vmem>>, vector<1x32xf32>
    %c0_9 = arith.constant 0 : index
    %c0_10 = arith.constant 0 : index
    %8 = vector.load %arg2[%c0_9, %c0_10] : memref<1x32xf32, #tpu.memory_space<vmem>>, vector<1x32xf32>
    %9 = vector.extract_strided_slice %5 {offsets = [0, 0], sizes = [1, 128], strides = [1, 1]} : vector<8x128xf32> to vector<1x128xf32>
    %cst_11 = arith.constant dense<0.000000e+00> : vector<1x128xf32>
    %10 = tpu.matmul %7, %6, %cst_11 {dimension_numbers = #tpu.dot_dimension_numbers<[1], [0], [0], [1], [0, 0, 1, 1], [], []>} : vector<1x32xf32>, vector<32x128xf32>, vector<1x128xf32> -> vector<1x128xf32>
    %11 = arith.addf %9, %10 : vector<1x128xf32>
    %12 = arith.negf %11 : vector<1x128xf32>
    %13 = math.exp %12 : vector<1x128xf32>
    %cst_12 = arith.constant 1.000000e+00 : f32
    %14 = vector.broadcast %cst_12 : f32 to vector<1x128xf32>
    %15 = arith.addf %14, %13 : vector<1x128xf32>
    %16 = arith.divf %14, %15 : vector<1x128xf32>
    %17 = vector.extract_strided_slice %16 {offsets = [0, 0], sizes = [1, 32], strides = [1, 1]} : vector<1x128xf32> to vector<1x32xf32>
    %18 = vector.extract_strided_slice %16 {offsets = [0, 32], sizes = [1, 32], strides = [1, 1]} : vector<1x128xf32> to vector<1x32xf32>
    %19 = vector.extract_strided_slice %16 {offsets = [0, 64], sizes = [1, 32], strides = [1, 1]} : vector<1x128xf32> to vector<1x32xf32>
    %cst_13 = arith.constant 2.000000e+00 : f32
    %20 = vector.broadcast %cst_13 : f32 to vector<1x32xf32>
    %21 = arith.mulf %20, %19 : vector<1x32xf32>
    %cst_14 = arith.constant 1.000000e+00 : f32
    %22 = vector.broadcast %cst_14 : f32 to vector<1x32xf32>
    %23 = arith.subf %21, %22 : vector<1x32xf32>
    %24 = vector.extract_strided_slice %16 {offsets = [0, 96], sizes = [1, 32], strides = [1, 1]} : vector<1x128xf32> to vector<1x32xf32>
    %25 = arith.mulf %18, %8 : vector<1x32xf32>
    %26 = arith.mulf %17, %23 : vector<1x32xf32>
    %27 = arith.addf %25, %26 : vector<1x32xf32>
    %28 = math.tanh %27 : vector<1x32xf32>
    %29 = arith.mulf %24, %28 : vector<1x32xf32>
    %30 = vector.extract_strided_slice %5 {offsets = [1, 0], sizes = [1, 128], strides = [1, 1]} : vector<8x128xf32> to vector<1x128xf32>
    %cst_15 = arith.constant dense<0.000000e+00> : vector<1x128xf32>
    %31 = tpu.matmul %29, %6, %cst_15 {dimension_numbers = #tpu.dot_dimension_numbers<[1], [0], [0], [1], [0, 0, 1, 1], [], []>} : vector<1x32xf32>, vector<32x128xf32>, vector<1x128xf32> -> vector<1x128xf32>
    %32 = arith.addf %30, %31 : vector<1x128xf32>
    %33 = arith.negf %32 : vector<1x128xf32>
    %34 = math.exp %33 : vector<1x128xf32>
    %cst_16 = arith.constant 1.000000e+00 : f32
    %35 = vector.broadcast %cst_16 : f32 to vector<1x128xf32>
    %36 = arith.addf %35, %34 : vector<1x128xf32>
    %37 = arith.divf %35, %36 : vector<1x128xf32>
    %38 = vector.extract_strided_slice %37 {offsets = [0, 0], sizes = [1, 32], strides = [1, 1]} : vector<1x128xf32> to vector<1x32xf32>
    %39 = vector.extract_strided_slice %37 {offsets = [0, 32], sizes = [1, 32], strides = [1, 1]} : vector<1x128xf32> to vector<1x32xf32>
    %40 = vector.extract_strided_slice %37 {offsets = [0, 64], sizes = [1, 32], strides = [1, 1]} : vector<1x128xf32> to vector<1x32xf32>
    %cst_17 = arith.constant 2.000000e+00 : f32
    %41 = vector.broadcast %cst_17 : f32 to vector<1x32xf32>
    %42 = arith.mulf %41, %40 : vector<1x32xf32>
    %cst_18 = arith.constant 1.000000e+00 : f32
    %43 = vector.broadcast %cst_18 : f32 to vector<1x32xf32>
    %44 = arith.subf %42, %43 : vector<1x32xf32>
    %45 = vector.extract_strided_slice %37 {offsets = [0, 96], sizes = [1, 32], strides = [1, 1]} : vector<1x128xf32> to vector<1x32xf32>
    %46 = arith.mulf %39, %27 : vector<1x32xf32>
    %47 = arith.mulf %38, %44 : vector<1x32xf32>
    %48 = arith.addf %46, %47 : vector<1x32xf32>
    %49 = math.tanh %48 : vector<1x32xf32>
    %50 = arith.mulf %45, %49 : vector<1x32xf32>
    %51 = vector.extract_strided_slice %5 {offsets = [2, 0], sizes = [1, 128], strides = [1, 1]} : vector<8x128xf32> to vector<1x128xf32>
    %cst_19 = arith.constant dense<0.000000e+00> : vector<1x128xf32>
    %52 = tpu.matmul %50, %6, %cst_19 {dimension_numbers = #tpu.dot_dimension_numbers<[1], [0], [0], [1], [0, 0, 1, 1], [], []>} : vector<1x32xf32>, vector<32x128xf32>, vector<1x128xf32> -> vector<1x128xf32>
    %53 = arith.addf %51, %52 : vector<1x128xf32>
    %54 = arith.negf %53 : vector<1x128xf32>
    %55 = math.exp %54 : vector<1x128xf32>
    %cst_20 = arith.constant 1.000000e+00 : f32
    %56 = vector.broadcast %cst_20 : f32 to vector<1x128xf32>
    %57 = arith.addf %56, %55 : vector<1x128xf32>
    %58 = arith.divf %56, %57 : vector<1x128xf32>
    %59 = vector.extract_strided_slice %58 {offsets = [0, 0], sizes = [1, 32], strides = [1, 1]} : vector<1x128xf32> to vector<1x32xf32>
    %60 = vector.extract_strided_slice %58 {offsets = [0, 32], sizes = [1, 32], strides = [1, 1]} : vector<1x128xf32> to vector<1x32xf32>
    %61 = vector.extract_strided_slice %58 {offsets = [0, 64], sizes = [1, 32], strides = [1, 1]} : vector<1x128xf32> to vector<1x32xf32>
    %cst_21 = arith.constant 2.000000e+00 : f32
    %62 = vector.broadcast %cst_21 : f32 to vector<1x32xf32>
    %63 = arith.mulf %62, %61 : vector<1x32xf32>
    %cst_22 = arith.constant 1.000000e+00 : f32
    %64 = vector.broadcast %cst_22 : f32 to vector<1x32xf32>
    %65 = arith.subf %63, %64 : vector<1x32xf32>
    %66 = vector.extract_strided_slice %58 {offsets = [0, 96], sizes = [1, 32], strides = [1, 1]} : vector<1x128xf32> to vector<1x32xf32>
    %67 = arith.mulf %60, %48 : vector<1x32xf32>
    %68 = arith.mulf %59, %65 : vector<1x32xf32>
    %69 = arith.addf %67, %68 : vector<1x32xf32>
    %70 = math.tanh %69 : vector<1x32xf32>
    %71 = arith.mulf %66, %70 : vector<1x32xf32>
    %72 = vector.extract_strided_slice %5 {offsets = [3, 0], sizes = [1, 128], strides = [1, 1]} : vector<8x128xf32> to vector<1x128xf32>
    %cst_23 = arith.constant dense<0.000000e+00> : vector<1x128xf32>
    %73 = tpu.matmul %71, %6, %cst_23 {dimension_numbers = #tpu.dot_dimension_numbers<[1], [0], [0], [1], [0, 0, 1, 1], [], []>} : vector<1x32xf32>, vector<32x128xf32>, vector<1x128xf32> -> vector<1x128xf32>
    %74 = arith.addf %72, %73 : vector<1x128xf32>
    %75 = arith.negf %74 : vector<1x128xf32>
    %76 = math.exp %75 : vector<1x128xf32>
    %cst_24 = arith.constant 1.000000e+00 : f32
    %77 = vector.broadcast %cst_24 : f32 to vector<1x128xf32>
    %78 = arith.addf %77, %76 : vector<1x128xf32>
    %79 = arith.divf %77, %78 : vector<1x128xf32>
    %80 = vector.extract_strided_slice %79 {offsets = [0, 0], sizes = [1, 32], strides = [1, 1]} : vector<1x128xf32> to vector<1x32xf32>
    %81 = vector.extract_strided_slice %79 {offsets = [0, 32], sizes = [1, 32], strides = [1, 1]} : vector<1x128xf32> to vector<1x32xf32>
    %82 = vector.extract_strided_slice %79 {offsets = [0, 64], sizes = [1, 32], strides = [1, 1]} : vector<1x128xf32> to vector<1x32xf32>
    %cst_25 = arith.constant 2.000000e+00 : f32
    %83 = vector.broadcast %cst_25 : f32 to vector<1x32xf32>
    %84 = arith.mulf %83, %82 : vector<1x32xf32>
    %cst_26 = arith.constant 1.000000e+00 : f32
    %85 = vector.broadcast %cst_26 : f32 to vector<1x32xf32>
    %86 = arith.subf %84, %85 : vector<1x32xf32>
    %87 = vector.extract_strided_slice %79 {offsets = [0, 96], sizes = [1, 32], strides = [1, 1]} : vector<1x128xf32> to vector<1x32xf32>
    %88 = arith.mulf %81, %69 : vector<1x32xf32>
    %89 = arith.mulf %80, %86 : vector<1x32xf32>
    %90 = arith.addf %88, %89 : vector<1x32xf32>
    %91 = math.tanh %90 : vector<1x32xf32>
    %92 = arith.mulf %87, %91 : vector<1x32xf32>
    %93 = vector.extract_strided_slice %5 {offsets = [4, 0], sizes = [1, 128], strides = [1, 1]} : vector<8x128xf32> to vector<1x128xf32>
    %cst_27 = arith.constant dense<0.000000e+00> : vector<1x128xf32>
    %94 = tpu.matmul %92, %6, %cst_27 {dimension_numbers = #tpu.dot_dimension_numbers<[1], [0], [0], [1], [0, 0, 1, 1], [], []>} : vector<1x32xf32>, vector<32x128xf32>, vector<1x128xf32> -> vector<1x128xf32>
    %95 = arith.addf %93, %94 : vector<1x128xf32>
    %96 = arith.negf %95 : vector<1x128xf32>
    %97 = math.exp %96 : vector<1x128xf32>
    %cst_28 = arith.constant 1.000000e+00 : f32
    %98 = vector.broadcast %cst_28 : f32 to vector<1x128xf32>
    %99 = arith.addf %98, %97 : vector<1x128xf32>
    %100 = arith.divf %98, %99 : vector<1x128xf32>
    %101 = vector.extract_strided_slice %100 {offsets = [0, 0], sizes = [1, 32], strides = [1, 1]} : vector<1x128xf32> to vector<1x32xf32>
    %102 = vector.extract_strided_slice %100 {offsets = [0, 32], sizes = [1, 32], strides = [1, 1]} : vector<1x128xf32> to vector<1x32xf32>
    %103 = vector.extract_strided_slice %100 {offsets = [0, 64], sizes = [1, 32], strides = [1, 1]} : vector<1x128xf32> to vector<1x32xf32>
    %cst_29 = arith.constant 2.000000e+00 : f32
    %104 = vector.broadcast %cst_29 : f32 to vector<1x32xf32>
    %105 = arith.mulf %104, %103 : vector<1x32xf32>
    %cst_30 = arith.constant 1.000000e+00 : f32
    %106 = vector.broadcast %cst_30 : f32 to vector<1x32xf32>
    %107 = arith.subf %105, %106 : vector<1x32xf32>
    %108 = vector.extract_strided_slice %100 {offsets = [0, 96], sizes = [1, 32], strides = [1, 1]} : vector<1x128xf32> to vector<1x32xf32>
    %109 = arith.mulf %102, %90 : vector<1x32xf32>
    %110 = arith.mulf %101, %107 : vector<1x32xf32>
    %111 = arith.addf %109, %110 : vector<1x32xf32>
    %112 = math.tanh %111 : vector<1x32xf32>
    %113 = arith.mulf %108, %112 : vector<1x32xf32>
    %114 = vector.extract_strided_slice %5 {offsets = [5, 0], sizes = [1, 128], strides = [1, 1]} : vector<8x128xf32> to vector<1x128xf32>
    %cst_31 = arith.constant dense<0.000000e+00> : vector<1x128xf32>
    %115 = tpu.matmul %113, %6, %cst_31 {dimension_numbers = #tpu.dot_dimension_numbers<[1], [0], [0], [1], [0, 0, 1, 1], [], []>} : vector<1x32xf32>, vector<32x128xf32>, vector<1x128xf32> -> vector<1x128xf32>
    %116 = arith.addf %114, %115 : vector<1x128xf32>
    %117 = arith.negf %116 : vector<1x128xf32>
    %118 = math.exp %117 : vector<1x128xf32>
    %cst_32 = arith.constant 1.000000e+00 : f32
    %119 = vector.broadcast %cst_32 : f32 to vector<1x128xf32>
    %120 = arith.addf %119, %118 : vector<1x128xf32>
    %121 = arith.divf %119, %120 : vector<1x128xf32>
    %122 = vector.extract_strided_slice %121 {offsets = [0, 0], sizes = [1, 32], strides = [1, 1]} : vector<1x128xf32> to vector<1x32xf32>
    %123 = vector.extract_strided_slice %121 {offsets = [0, 32], sizes = [1, 32], strides = [1, 1]} : vector<1x128xf32> to vector<1x32xf32>
    %124 = vector.extract_strided_slice %121 {offsets = [0, 64], sizes = [1, 32], strides = [1, 1]} : vector<1x128xf32> to vector<1x32xf32>
    %cst_33 = arith.constant 2.000000e+00 : f32
    %125 = vector.broadcast %cst_33 : f32 to vector<1x32xf32>
    %126 = arith.mulf %125, %124 : vector<1x32xf32>
    %cst_34 = arith.constant 1.000000e+00 : f32
    %127 = vector.broadcast %cst_34 : f32 to vector<1x32xf32>
    %128 = arith.subf %126, %127 : vector<1x32xf32>
    %129 = vector.extract_strided_slice %121 {offsets = [0, 96], sizes = [1, 32], strides = [1, 1]} : vector<1x128xf32> to vector<1x32xf32>
    %130 = arith.mulf %123, %111 : vector<1x32xf32>
    %131 = arith.mulf %122, %128 : vector<1x32xf32>
    %132 = arith.addf %130, %131 : vector<1x32xf32>
    %133 = math.tanh %132 : vector<1x32xf32>
    %134 = arith.mulf %129, %133 : vector<1x32xf32>
    %135 = vector.extract_strided_slice %5 {offsets = [6, 0], sizes = [1, 128], strides = [1, 1]} : vector<8x128xf32> to vector<1x128xf32>
    %cst_35 = arith.constant dense<0.000000e+00> : vector<1x128xf32>
    %136 = tpu.matmul %134, %6, %cst_35 {dimension_numbers = #tpu.dot_dimension_numbers<[1], [0], [0], [1], [0, 0, 1, 1], [], []>} : vector<1x32xf32>, vector<32x128xf32>, vector<1x128xf32> -> vector<1x128xf32>
    %137 = arith.addf %135, %136 : vector<1x128xf32>
    %138 = arith.negf %137 : vector<1x128xf32>
    %139 = math.exp %138 : vector<1x128xf32>
    %cst_36 = arith.constant 1.000000e+00 : f32
    %140 = vector.broadcast %cst_36 : f32 to vector<1x128xf32>
    %141 = arith.addf %140, %139 : vector<1x128xf32>
    %142 = arith.divf %140, %141 : vector<1x128xf32>
    %143 = vector.extract_strided_slice %142 {offsets = [0, 0], sizes = [1, 32], strides = [1, 1]} : vector<1x128xf32> to vector<1x32xf32>
    %144 = vector.extract_strided_slice %142 {offsets = [0, 32], sizes = [1, 32], strides = [1, 1]} : vector<1x128xf32> to vector<1x32xf32>
    %145 = vector.extract_strided_slice %142 {offsets = [0, 64], sizes = [1, 32], strides = [1, 1]} : vector<1x128xf32> to vector<1x32xf32>
    %cst_37 = arith.constant 2.000000e+00 : f32
    %146 = vector.broadcast %cst_37 : f32 to vector<1x32xf32>
    %147 = arith.mulf %146, %145 : vector<1x32xf32>
    %cst_38 = arith.constant 1.000000e+00 : f32
    %148 = vector.broadcast %cst_38 : f32 to vector<1x32xf32>
    %149 = arith.subf %147, %148 : vector<1x32xf32>
    %150 = vector.extract_strided_slice %142 {offsets = [0, 96], sizes = [1, 32], strides = [1, 1]} : vector<1x128xf32> to vector<1x32xf32>
    %151 = arith.mulf %144, %132 : vector<1x32xf32>
    %152 = arith.mulf %143, %149 : vector<1x32xf32>
    %153 = arith.addf %151, %152 : vector<1x32xf32>
    %154 = math.tanh %153 : vector<1x32xf32>
    %155 = arith.mulf %150, %154 : vector<1x32xf32>
    %156 = vector.extract_strided_slice %5 {offsets = [7, 0], sizes = [1, 128], strides = [1, 1]} : vector<8x128xf32> to vector<1x128xf32>
    %cst_39 = arith.constant dense<0.000000e+00> : vector<1x128xf32>
    %157 = tpu.matmul %155, %6, %cst_39 {dimension_numbers = #tpu.dot_dimension_numbers<[1], [0], [0], [1], [0, 0, 1, 1], [], []>} : vector<1x32xf32>, vector<32x128xf32>, vector<1x128xf32> -> vector<1x128xf32>
    %158 = arith.addf %156, %157 : vector<1x128xf32>
    %159 = arith.negf %158 : vector<1x128xf32>
    %160 = math.exp %159 : vector<1x128xf32>
    %cst_40 = arith.constant 1.000000e+00 : f32
    %161 = vector.broadcast %cst_40 : f32 to vector<1x128xf32>
    %162 = arith.addf %161, %160 : vector<1x128xf32>
    %163 = arith.divf %161, %162 : vector<1x128xf32>
    %164 = vector.extract_strided_slice %163 {offsets = [0, 0], sizes = [1, 32], strides = [1, 1]} : vector<1x128xf32> to vector<1x32xf32>
    %165 = vector.extract_strided_slice %163 {offsets = [0, 32], sizes = [1, 32], strides = [1, 1]} : vector<1x128xf32> to vector<1x32xf32>
    %166 = vector.extract_strided_slice %163 {offsets = [0, 64], sizes = [1, 32], strides = [1, 1]} : vector<1x128xf32> to vector<1x32xf32>
    %cst_41 = arith.constant 2.000000e+00 : f32
    %167 = vector.broadcast %cst_41 : f32 to vector<1x32xf32>
    %168 = arith.mulf %167, %166 : vector<1x32xf32>
    %cst_42 = arith.constant 1.000000e+00 : f32
    %169 = vector.broadcast %cst_42 : f32 to vector<1x32xf32>
    %170 = arith.subf %168, %169 : vector<1x32xf32>
    %171 = vector.extract_strided_slice %163 {offsets = [0, 96], sizes = [1, 32], strides = [1, 1]} : vector<1x128xf32> to vector<1x32xf32>
    %172 = arith.mulf %165, %153 : vector<1x32xf32>
    %173 = arith.mulf %164, %170 : vector<1x32xf32>
    %174 = arith.addf %172, %173 : vector<1x32xf32>
    %175 = math.tanh %174 : vector<1x32xf32>
    %176 = arith.mulf %171, %175 : vector<1x32xf32>
    %177 = tpu.concatenate %29, %50, %71, %92, %113, %134, %155, %176 in 0 : vector<1x32xf32>, vector<1x32xf32>, vector<1x32xf32>, vector<1x32xf32>, vector<1x32xf32>, vector<1x32xf32>, vector<1x32xf32>, vector<1x32xf32> -> vector<8x32xf32>
    %c0_43 = arith.constant 0 : index
    %c0_44 = arith.constant 0 : index
    %178 = vector.load %arg6[%c0_43, %c0_44] : memref<32x128xf32, #tpu.memory_space<vmem>>, vector<32x128xf32>
    %cst_45 = arith.constant dense<0.000000e+00> : vector<8x128xf32>
    %179 = tpu.matmul %177, %178, %cst_45 {dimension_numbers = #tpu.dot_dimension_numbers<[1], [0], [0], [1], [0, 0, 1, 1], [], []>} : vector<8x32xf32>, vector<32x128xf32>, vector<8x128xf32> -> vector<8x128xf32>
    %c0_46 = arith.constant 0 : index
    %c0_47 = arith.constant 0 : index
    %180 = vector.load %arg7[%c0_46, %c0_47] : memref<1x128xf32, #tpu.memory_space<vmem>>, vector<1x128xf32>
    %181 = vector.broadcast %180 : vector<1x128xf32> to vector<8x128xf32>
    %182 = arith.addf %179, %181 : vector<8x128xf32>
    %c0_48 = arith.constant 0 : index
    %c0_49 = arith.constant 0 : index
    %183 = vector.load %arg8[%c0_48, %c0_49] : memref<8x128xf32, #tpu.memory_space<vmem>>, vector<8x128xf32>
    tpu.vector_store %arg8[%c0_48, %c0_49], %182 {strides = array<i32>} : memref<8x128xf32, #tpu.memory_space<vmem>>, vector<8x128xf32>,
    return
  }
}

</mosaic_0001>

<bundles_post_ra>
// kernel: decoder_forward.1
= control target key start
LH: loop header
LB: loop body
LE: loop exit
PB: predicated region body
PF: predicated region fallthrough
CT: control target
= control target key end

     0   :  { %13 = vsyncpa [#allocation3], 0  ;;  %s1149_s0 = inlined_call_operand.hbm [shape: f32[8,16], index: 0, kind: input, shape index: {}]   ;;  %s1150_s1 = inlined_call_operand.hbm [shape: f32[1,32], index: 1, kind: input, shape index: {}]   ;;  %s1151_s2 = inlined_call_operand.vmem [shape: f32[1,32], index: 2, kind: input, shape index: {}]   ;;  %s1152_s3 = inlined_call_operand.hbm [shape: f32[16,128], index: 3, kind: input, shape index: {}]   ;;  %s1153_s4 = inlined_call_operand.hbm [shape: f32[32,128], index: 4, kind: input, shape index: {}]   ;;  %s1154_s5 = inlined_call_operand.vmem [shape: f32[1,128], index: 5, kind: input, shape index: {}]   ;;  %s1155_s6 = inlined_call_operand.hbm [shape: f32[32,128], index: 6, kind: input, shape index: {}]   ;;  %s1156_s7 = inlined_call_operand.vmem [shape: f32[1,128], index: 7, kind: input, shape index: {}]   ;;  %s1157_s8 = inlined_call_operand.hbm [shape: f32[8,128], index: 8, kind: output, shape index: {}]  }
   0x1   :  { %14 = vsyncpa [#allocation6], 0 }
   0x2   :  { %15 = vsyncpa [#allocation9], 0  ;;  %s33_s29 = sshll.u32 %s1150_s1, 4  ;;  %s34_s29 = int_to_ptr.hbm [resolvable:$true] %s33_s29 }
   0x3   :  { %16 = vsyncpa [#allocation4], 0  ;;  %s1011_s30 = smov [#allocation5]   ;;  %s58_s12 = sshll.u32 %s1153_s4, 4  ;;  %s59_s12 = int_to_ptr.hbm [resolvable:$true] %s58_s12 }
   0x4   :  { %s35_s9 = sshll.u32 %s1011_s30, 4  ;;  %s1012_s13 = smov [#allocation8]   ;;  %s36_s9 = int_to_ptr.vmem [resolvable:$true] %s35_s9 }
   0x5   :  { %38 = dma.hbm_to_vmem [thread:$0]  %s34_s29, 16, %s36_s9, [#allocation6]  }
   0x6   :  { %s60_s14 = sshll.u32 %s1012_s13, 4  ;;  %s22_s17 = sshll.u32 %s1149_s0, 4  ;;  %s61_s14 = int_to_ptr.vmem [resolvable:$true] %s60_s14  ;;  %s23_s17 = int_to_ptr.hbm [resolvable:$true] %s22_s17 }
   0x7   :  { %s1013_s1 = smov 128   ;;  %s1014_s18 = smov 8  }
   0x8   :  { %66 = dma.hbm_to_vmem [thread:$0]  %s59_s12, 512, %s61_s14, [#allocation9], %s1013_s1, %s1013_s1, %s1014_s18  }
   0x9   :  { %s45_s21 = sshll.u32 %s1152_s3, 4  ;;  %s1015_s22 = smov [#allocation2]   ;;  %s46_s21 = int_to_ptr.hbm [resolvable:$true] %s45_s21 }
   0xa   :  { %s24_s23 = sshll.u32 %s1015_s22, 4  ;;  %s1016_s4 = smov [#allocation7]   ;;  %s25_s23 = int_to_ptr.vmem [resolvable:$true] %s24_s23 }
   0xb   :  { %27 = dma.hbm_to_vmem [thread:$0]  %s23_s17, 128, %s25_s23, [#allocation3]  }
   0xc   :  { %s47_s24 = sshll.u32 %s1016_s4, 4  ;;  %s73_s0 = sshll.u32 %s1155_s6, 4  ;;  %s48_s24 = int_to_ptr.vmem [resolvable:$true] %s47_s24  ;;  %s74_s0 = int_to_ptr.hbm [resolvable:$true] %s73_s0 }
   0xd   :  { %53 = dma.hbm_to_vmem [thread:$0]  %s46_s21, 256, %s48_s24, [#allocation6], %s1013_s1, %s1013_s1, %s1014_s18  }
   0xe   :  { %s1017_s27 = smov [#allocation10]  }
   0xf   :  { %s75_s28 = sshll.u32 %s1017_s27, 4  ;;  %s76_s28 = int_to_ptr.vmem [resolvable:$true] %s75_s28 }
  0x10   :  { %81 = dma.hbm_to_vmem [thread:$0]  %s74_s0, 512, %s76_s28, [#allocation9], %s1013_s1, %s1013_s1, %s1014_s18  }
  0x11   :  { %1003 = dma.done.wait [#allocation3], 128  }
  0x12   :  { %1004 = vsyncadd [#allocation3], 4294967168 }
  0x13   :  { %1005 = dma.done.wait [#allocation6], 272  }
  0x14   :  { %1006 = vsyncadd [#allocation6], 4294967024 }
  0x15   :  { %1007 = dma.done.wait [#allocation9], 1024  }
  0x16   :  { %1008 = vsyncadd [#allocation9], 4294966272  ;;  %v138_v0 = vld [vmem:[#allocation8 + $0x18] sm:$0xff]  ;;  %v137_v2 = vld [vmem:[#allocation8 + $0x10] sm:$0xff]  ;;  %vm111_vm0 = vcmask 130048   ;;  %vm141_vm1 = vcmask 261120  }
  0x17   :  { %v106_v1 = vld [vmem:[#allocation7 + $0x8] sm:$0xff]  ;;  %157 = vmatpush.msra.mxu1 %v138_v0  ;;  %v105_v3 = vld [vmem:[#allocation7] sm:$0xff]  ;;  %v104_v4 = vld [vmem:[#allocation2] sm:$0xff]  ;;  %226 = vmatpush.msra.mxu2 %v138_v0  ;;  %s1019_s9 = smov 32   ;;  %vm705_vm14 = vcmask 1040384   ;;  %vm707_vm15 = vcmask 1041408  }
  0x18   :  { %129 = vmatpush.msra.mxu0 %v106_v1  ;;  %v136_v5 = vld [vmem:[#allocation8 + $0x8] sm:$0xff]  ;;  %297 = vmatpush.msra.mxu3 %v138_v0  ;;  %v135_v6 = vld [vmem:[#allocation8] sm:$0xff]  ;;  %s1020_s11 = smov [#allocation11]   ;;  %s760_s15 = sshll.u32 %s1157_s8, 4  ;;  %s761_s15 = int_to_ptr.hbm [resolvable:$true] %s760_s15 }
  0x19   :  { %158 = vmatpush.msra.mxu1 %v137_v2  ;;  %227 = vmatpush.msra.mxu2 %v137_v2  ;;  %v139_v7 = vld [vmem:[#allocation5] sm:$0x1]  ;;  %v808_v8 = vld [vmem:[%s1154_s5] ss:$0 sm:$0xff]  ;;  %s1018_s5 = smov 64   ;;  %s758_s12 = sshll.u32 %s1020_s11, 4  ;;  %s759_s12 = int_to_ptr.vmem [resolvable:$true] %s758_s12 }
  0x1a   :  { %130 = vmatpush.msra.mxu0 %v105_v3  ;;  %298 = vmatpush.msra.mxu3 %v137_v2  ;;  %v809_v28 = vld [vmem:[%s1151_s2] ss:$0 sm:$0xff] }
  0x1b   :  { %772 = vmatmul.msk.f32.vlgmr.msra.gmra.mxu0 %vm111_vm0, %v104_v4  ;;  %159 = vmatpush.msra.mxu1 %v136_v5 }
  0x1c   :  { %228 = vmatpush.msra.mxu2 %v136_v5  ;;  %368 = vmatpush.msrb.mxu0 %v138_v0 }
  0x1d   :  { %160 = vmatpush.msra.mxu1 %v135_v6  ;;  %299 = vmatpush.msra.mxu3 %v136_v5 }
  0x1e   :  { %773 = vmatmul.msk.f32.vlgmr.msra.gmra.mxu1 %vm141_vm1, %v139_v7  ;;  %229 = vmatpush.msra.mxu2 %v135_v6 }
  0x1f   :  { %300 = vmatpush.msra.mxu3 %v135_v6  ;;  %369 = vmatpush.msrb.mxu0 %v137_v2 }
  0x20   :  { %439 = vmatpush.msrb.mxu1 %v138_v0  ;;  %510 = vmatpush.msrb.mxu2 %v138_v0 }
  0x21   :  { %370 = vmatpush.msrb.mxu0 %v136_v5  ;;  %581 = vmatpush.msrb.mxu3 %v138_v0 }
  0x22   :  { %440 = vmatpush.msrb.mxu1 %v137_v2  ;;  %511 = vmatpush.msrb.mxu2 %v137_v2 }
  0x23   :  { %371 = vmatpush.msrb.mxu0 %v135_v6  ;;  %582 = vmatpush.msrb.mxu3 %v137_v2 }
  0x24   :  { %441 = vmatpush.msrb.mxu1 %v136_v5  ;;  %512 = vmatpush.msrb.mxu2 %v136_v5 }
  0x25   :  { %583 = vmatpush.msrb.mxu3 %v136_v5  ;;  %652 = vmatpush.msra.mxu0 %v138_v0 }
  0x26   :  { %442 = vmatpush.msrb.mxu1 %v135_v6  ;;  %513 = vmatpush.msrb.mxu2 %v135_v6 }
  0x27   :  { %584 = vmatpush.msrb.mxu3 %v135_v6  ;;  %653 = vmatpush.msra.mxu0 %v137_v2 }
  0x29   :  { %654 = vmatpush.msra.mxu0 %v136_v5 }
  0x2b   :  { %655 = vmatpush.msra.mxu0 %v135_v6 }
  0x98   :  { %v132_v9 = vpop.f32.mrf.mxu0 }
  0x99   :  { %v1085_v10 = vadd.f32 %v808_v8, %v132_v9 }
  0x9b   :  { %v162_v11 = vpop.f32.mrf.mxu1 }
  0x9c   :  { %v165_v12 = vadd.f32 %v162_v11, %v1085_v10 }
  0x9e   :  { %v774_v13 = vmul.f32 -1.442695, %v165_v12 }
  0xa0   :  { %811 = vpow2.f32 %v774_v13 }
  0xa6   :  { %v812_v14 = vpop.eup %811 }
  0xa7   :  { %v169_v15 = vadd.f32 1.0, %v812_v14 }
  0xa9   :  { %813 = vrcp.f32 %v169_v15  ;;  %v181_v19 = vand.u32 2147483648, %v169_v15  ;;  %v179_v21 = vand.u32 2147483647, %v169_v15  ;;  %vm175_vm3 = vweird.f32 %v169_v15 }
  0xab   :  { %v182_v23 = vor.u32 1.1754944e-38, %v181_v19  ;;  %vm180_vm5 = vcmp.eq.f32.partialorder %v179_v21, 8.507059e+37 }
  0xaf   :  { %v814_v16 = vpop.eup %813 }
  0xb0   :  { %v171_v17 = vmul.f32 %v814_v16, %v169_v15  ;;  %vm176_vm2 = vweird.f32 %v814_v16 }
  0xb1   :  { %vm177_vm4 = vmor %vm175_vm3, %vm176_vm2 }
  0xb2   :  { %v172_v18 = vsub.f32 1.0, %v171_v17 }
  0xb4   :  { %v173_v20 = vmul.f32 %v814_v16, %v172_v18 }
  0xb6   :  { %v174_v22 = vadd.f32 %v814_v16, %v173_v20 }
  0xb8   :  { %v178_v24 = vsel %vm177_vm4, %v814_v16, %v174_v22 }
  0xb9   :  { %v183_v25 = vsel %vm180_vm5, %v182_v23, %v178_v24  ;;  %vm709_vm5 = vcmask 1042432  }
  0xba   :  { %v185_v26 = vmul.f32 2.0, %v183_v25 }
  0xbc   :  { %v775_v27 = vadd.f32 -1.0, %v185_v26 }
  0xbe   :  { %194 = vrot.lane.b32.xlu0 %v775_v27, %s1018_s5 }
  0xc6   :  { %189 = vrot.lane.b32.xlu0 %v809_v28, %s1019_s9 }
 0x130   :  { %v195_v29 = vpop.permute.xlu0 %194 }
 0x131   :  { %v197_v30 = vmul.f32 %v195_v29, %v183_v25 }
 0x133   :  { %199 = vrot.lane.b32.xlu1 %v197_v30, %s1019_s9 }
 0x138   :  { %v190_v31 = vpop.permute.xlu0 %189 }
 0x139   :  { %v192_v32 = vmul.f32 %v190_v31, %v183_v25 }
 0x1a5   :  { %v200_v33 = vpop.permute.xlu1 %199 }
 0x1a6   :  { %v202_v34 = vadd.f32 %v200_v33, %v192_v32 }
 0x1a8   :  { %815 = vtanh.f32 %v202_v34  ;;  %v260_v59 = vrot.slane %v202_v34, 7 }
 0x1ae   :  { %v816_v35 = vpop.eup %815 }
 0x1af   :  { %205 = vrot.lane.b32.xlu1 %v816_v35, %s1018_s5 }
 0x221   :  { %v206_v36 = vpop.permute.xlu1 %205 }
 0x222   :  { %v1095_v37 = vmul.f32 %v206_v36, %v183_v25 }
 0x224   :  { %210 = vrot.lane.b32.xlu2 %v1095_v37, %s1019_s9 }
 0x27e   :  { %v211_v38 = vpop.permute.xlu2 %210 }
 0x27f   :  { %776 = vmatmul.msk.f32.vlgmr.msra.gmra.mxu2 %vm141_vm1, %v211_v38 }
 0x302   :  { %v231_v39 = vpop.f32.mrf.mxu2 }
 0x303   :  { %v235_v40 = vrot.slane %v231_v39, 7 }
 0x305   :  { %v237_v41 = vadd.f32 %v235_v40, %v1085_v10 }
 0x307   :  { %v777_v42 = vmul.f32 -1.442695, %v237_v41 }
 0x309   :  { %817 = vpow2.f32 %v777_v42 }
 0x30f   :  { %v818_v43 = vpop.eup %817 }
 0x310   :  { %v241_v44 = vadd.f32 1.0, %v818_v43 }
 0x312   :  { %819 = vrcp.f32 %v241_v44  ;;  %v253_v48 = vand.u32 2147483648, %v241_v44  ;;  %v251_v50 = vand.u32 2147483647, %v241_v44  ;;  %vm247_vm7 = vweird.f32 %v241_v44 }
 0x314   :  { %v254_v52 = vor.u32 1.1754944e-38, %v253_v48  ;;  %vm252_vm9 = vcmp.eq.f32.partialorder %v251_v50, 8.507059e+37 }
 0x318   :  { %v820_v45 = vpop.eup %819 }
 0x319   :  { %v243_v46 = vmul.f32 %v820_v45, %v241_v44  ;;  %vm248_vm6 = vweird.f32 %v820_v45 }
 0x31a   :  { %vm249_vm8 = vmor %vm247_vm7, %vm248_vm6 }
 0x31b   :  { %v244_v47 = vsub.f32 1.0, %v243_v46 }
 0x31d   :  { %v245_v49 = vmul.f32 %v820_v45, %v244_v47 }
 0x31f   :  { %v246_v51 = vadd.f32 %v820_v45, %v245_v49 }
 0x321   :  { %v250_v53 = vsel %vm249_vm8, %v820_v45, %v246_v51 }
 0x322   :  { %v255_v54 = vsel %vm252_vm9, %v254_v52, %v250_v53 }
 0x323   :  { %v257_v55 = vmul.f32 2.0, %v255_v54  ;;  %v262_v60 = vmul.f32 %v260_v59, %v255_v54 }
 0x325   :  { %v778_v56 = vadd.f32 -1.0, %v257_v55 }
 0x327   :  { %264 = vrot.lane.b32.xlu2 %v778_v56, %s1018_s5 }
 0x381   :  { %v265_v57 = vpop.permute.xlu2 %264 }
 0x382   :  { %v267_v58 = vmul.f32 %v265_v57, %v255_v54 }
 0x384   :  { %269 = vrot.lane.b32.xlu0 %v267_v58, %s1019_s9 }
 0x3f6   :  { %v270_v61 = vpop.permute.xlu0 %269 }
 0x3f7   :  { %v272_v62 = vadd.f32 %v270_v61, %v262_v60 }
 0x3f9   :  { %821 = vtanh.f32 %v272_v62  ;;  %v331_v25 = vrot.slane %v272_v62, 7 }
 0x3ff   :  { %v822_v63 = vpop.eup %821 }
 0x400   :  { %275 = vrot.lane.b32.xlu1 %v822_v63, %s1018_s5 }
 0x472   :  { %v276_v0 = vpop.permute.xlu1 %275 }
 0x473   :  { %v278_v1 = vmul.f32 %v276_v0, %v255_v54 }
 0x475   :  { %v280_v2 = vrot.slane %v278_v1, 1  ;;  %v706_v32 = vsel %vm705_vm14, %v1095_v37, %v278_v1 }
 0x477   :  { %281 = vrot.lane.b32.xlu2 %v280_v2, %s1019_s9 }
 0x4d1   :  { %v282_v3 = vpop.permute.xlu2 %281 }
 0x4d2   :  { %779 = vmatmul.msk.f32.vlgmr.msra.gmra.mxu3 %vm141_vm1, %v282_v3 }
 0x555   :  { %v302_v4 = vpop.f32.mrf.mxu3 }
 0x556   :  { %v306_v5 = vrot.slane %v302_v4, 6 }
 0x558   :  { %v308_v6 = vadd.f32 %v306_v5, %v1085_v10 }
 0x55a   :  { %v780_v7 = vmul.f32 -1.442695, %v308_v6 }
 0x55c   :  { %823 = vpow2.f32 %v780_v7 }
 0x562   :  { %v824_v8 = vpop.eup %823 }
 0x563   :  { %v312_v9 = vadd.f32 1.0, %v824_v8 }
 0x565   :  { %825 = vrcp.f32 %v312_v9  ;;  %v324_v14 = vand.u32 2147483648, %v312_v9  ;;  %v322_v16 = vand.u32 2147483647, %v312_v9  ;;  %vm318_vm11 = vweird.f32 %v312_v9 }
 0x567   :  { %v325_v18 = vor.u32 1.1754944e-38, %v324_v14  ;;  %vm323_vm13 = vcmp.eq.f32.partialorder %v322_v16, 8.507059e+37 }
 0x56b   :  { %v826_v11 = vpop.eup %825 }
 0x56c   :  { %v314_v12 = vmul.f32 %v826_v11, %v312_v9  ;;  %vm319_vm10 = vweird.f32 %v826_v11 }
 0x56d   :  { %vm320_vm12 = vmor %vm318_vm11, %vm319_vm10  ;;  %vm711_vm10 = vcmask 1043456  }
 0x56e   :  { %v315_v13 = vsub.f32 1.0, %v314_v12 }
 0x570   :  { %v316_v15 = vmul.f32 %v826_v11, %v315_v13 }
 0x572   :  { %v317_v17 = vadd.f32 %v826_v11, %v316_v15 }
 0x574   :  { %v321_v19 = vsel %vm320_vm12, %v826_v11, %v317_v17 }
 0x575   :  { %v326_v20 = vsel %vm323_vm13, %v325_v18, %v321_v19 }
 0x576   :  { %v328_v21 = vmul.f32 2.0, %v326_v20  ;;  %v333_v26 = vmul.f32 %v331_v25, %v326_v20 }
 0x578   :  { %v781_v22 = vadd.f32 -1.0, %v328_v21 }
 0x57a   :  { %335 = vrot.lane.b32.xlu0 %v781_v22, %s1018_s5 }
 0x5ec   :  { %v336_v23 = vpop.permute.xlu0 %335 }
 0x5ed   :  { %v338_v24 = vmul.f32 %v336_v23, %v326_v20 }
 0x5ef   :  { %340 = vrot.lane.b32.xlu1 %v338_v24, %s1019_s9 }
 0x661   :  { %v341_v27 = vpop.permute.xlu1 %340 }
 0x662   :  { %v343_v28 = vadd.f32 %v341_v27, %v333_v26 }
 0x664   :  { %827 = vtanh.f32 %v343_v28  ;;  %v402_v56 = vrot.slane %v343_v28, 7 }
 0x66a   :  { %v828_v29 = vpop.eup %827 }
 0x66b   :  { %346 = vrot.lane.b32.xlu2 %v828_v29, %s1018_s5 }
 0x6c5   :  { %v347_v30 = vpop.permute.xlu2 %346 }
 0x6c6   :  { %v349_v31 = vmul.f32 %v347_v30, %v326_v20 }
 0x6c8   :  { %v351_v33 = vrot.slane %v349_v31, 2  ;;  %v708_v34 = vsel %vm707_vm15, %v706_v32, %v349_v31  ;;  %vm713_vm15 = vcmask 1044480  }
 0x6ca   :  { %352 = vrot.lane.b32.xlu0 %v351_v33, %s1019_s9 }
 0x73c   :  { %v353_v35 = vpop.permute.xlu0 %352 }
 0x73d   :  { %782 = vmatmul.msk.f32.vlgmr.msrb.gmra.mxu0 %vm141_vm1, %v353_v35 }
 0x7ba   :  { %v373_v36 = vpop.f32.mrf.mxu0 }
 0x7bb   :  { %v377_v38 = vrot.slane %v373_v36, 5 }
 0x7bd   :  { %v379_v39 = vadd.f32 %v377_v38, %v1085_v10 }
 0x7bf   :  { %v783_v40 = vmul.f32 -1.442695, %v379_v39 }
 0x7c1   :  { %829 = vpow2.f32 %v783_v40 }
 0x7c7   :  { %v830_v41 = vpop.eup %829 }
 0x7c8   :  { %v383_v42 = vadd.f32 1.0, %v830_v41 }
 0x7ca   :  { %831 = vrcp.f32 %v383_v42  ;;  %v395_v37 = vand.u32 2147483648, %v383_v42  ;;  %v393_v47 = vand.u32 2147483647, %v383_v42  ;;  %vm389_vm2 = vweird.f32 %v383_v42 }
 0x7cc   :  { %v396_v49 = vor.u32 1.1754944e-38, %v395_v37  ;;  %vm394_vm4 = vcmp.eq.f32.partialorder %v393_v47, 8.507059e+37 }
 0x7d0   :  { %v832_v43 = vpop.eup %831 }
 0x7d1   :  { %v385_v44 = vmul.f32 %v832_v43, %v383_v42  ;;  %vm390_vm0 = vweird.f32 %v832_v43 }
 0x7d2   :  { %vm391_vm3 = vmor %vm389_vm2, %vm390_vm0 }
 0x7d3   :  { %v386_v45 = vsub.f32 1.0, %v385_v44 }
 0x7d5   :  { %v387_v46 = vmul.f32 %v832_v43, %v386_v45 }
 0x7d7   :  { %v388_v48 = vadd.f32 %v832_v43, %v387_v46 }
 0x7d9   :  { %v392_v50 = vsel %vm391_vm3, %v832_v43, %v388_v48 }
 0x7da   :  { %v397_v51 = vsel %vm394_vm4, %v396_v49, %v392_v50 }
 0x7db   :  { %v399_v52 = vmul.f32 2.0, %v397_v51  ;;  %v404_v57 = vmul.f32 %v402_v56, %v397_v51 }
 0x7dd   :  { %v784_v53 = vadd.f32 -1.0, %v399_v52 }
 0x7df   :  { %406 = vrot.lane.b32.xlu1 %v784_v53, %s1018_s5 }
 0x851   :  { %v407_v54 = vpop.permute.xlu1 %406 }
 0x852   :  { %v409_v55 = vmul.f32 %v407_v54, %v397_v51 }
 0x854   :  { %411 = vrot.lane.b32.xlu2 %v409_v55, %s1019_s9 }
 0x8ae   :  { %v412_v58 = vpop.permute.xlu2 %411 }
 0x8af   :  { %v414_v59 = vadd.f32 %v412_v58, %v404_v57 }
 0x8b1   :  { %833 = vtanh.f32 %v414_v59  ;;  %v473_v23 = vrot.slane %v414_v59, 7 }
 0x8b7   :  { %v834_v60 = vpop.eup %833 }
 0x8b8   :  { %417 = vrot.lane.b32.xlu0 %v834_v60, %s1018_s5 }
 0x92a   :  { %v418_v61 = vpop.permute.xlu0 %417 }
 0x92b   :  { %v420_v62 = vmul.f32 %v418_v61, %v397_v51 }
 0x92d   :  { %v422_v63 = vrot.slane %v420_v62, 3  ;;  %v710_v0 = vsel %vm709_vm5, %v708_v34, %v420_v62  ;;  %vm715_vm5 = vcmask 1045504  }
 0x92f   :  { %423 = vrot.lane.b32.xlu1 %v422_v63, %s1019_s9 }
 0x9a1   :  { %v424_v1 = vpop.permute.xlu1 %423 }
 0x9a2   :  { %785 = vmatmul.msk.f32.vlgmr.msrb.gmra.mxu1 %vm141_vm1, %v424_v1 }
 0xa1f   :  { %v444_v2 = vpop.f32.mrf.mxu1 }
 0xa20   :  { %v448_v3 = vrot.slane %v444_v2, 4 }
 0xa22   :  { %v450_v4 = vadd.f32 %v448_v3, %v1085_v10 }
 0xa24   :  { %v786_v5 = vmul.f32 -1.442695, %v450_v4 }
 0xa26   :  { %835 = vpow2.f32 %v786_v5 }
 0xa2c   :  { %v836_v6 = vpop.eup %835 }
 0xa2d   :  { %v454_v7 = vadd.f32 1.0, %v836_v6 }
 0xa2f   :  { %837 = vrcp.f32 %v454_v7  ;;  %v466_v12 = vand.u32 2147483648, %v454_v7  ;;  %v464_v14 = vand.u32 2147483647, %v454_v7  ;;  %vm460_vm7 = vweird.f32 %v454_v7 }
 0xa31   :  { %v467_v16 = vor.u32 1.1754944e-38, %v466_v12  ;;  %vm465_vm9 = vcmp.eq.f32.partialorder %v464_v14, 8.507059e+37 }
 0xa35   :  { %v838_v8 = vpop.eup %837 }
 0xa36   :  { %v456_v9 = vmul.f32 %v838_v8, %v454_v7  ;;  %vm461_vm6 = vweird.f32 %v838_v8 }
 0xa37   :  { %vm462_vm8 = vmor %vm460_vm7, %vm461_vm6 }
 0xa38   :  { %v457_v11 = vsub.f32 1.0, %v456_v9 }
 0xa3a   :  { %v458_v13 = vmul.f32 %v838_v8, %v457_v11 }
 0xa3c   :  { %v459_v15 = vadd.f32 %v838_v8, %v458_v13 }
 0xa3e   :  { %v463_v17 = vsel %vm462_vm8, %v838_v8, %v459_v15 }
 0xa3f   :  { %v468_v18 = vsel %vm465_vm9, %v467_v16, %v463_v17 }
 0xa40   :  { %v470_v19 = vmul.f32 2.0, %v468_v18  ;;  %v475_v24 = vmul.f32 %v473_v23, %v468_v18 }
 0xa42   :  { %v787_v20 = vadd.f32 -1.0, %v470_v19 }
 0xa44   :  { %477 = vrot.lane.b32.xlu2 %v787_v20, %s1018_s5 }
 0xa9e   :  { %v478_v21 = vpop.permute.xlu2 %477 }
 0xa9f   :  { %v480_v22 = vmul.f32 %v478_v21, %v468_v18 }
 0xaa1   :  { %482 = vrot.lane.b32.xlu0 %v480_v22, %s1019_s9 }
 0xb13   :  { %v483_v25 = vpop.permute.xlu0 %482 }
 0xb14   :  { %v485_v26 = vadd.f32 %v483_v25, %v475_v24 }
 0xb16   :  { %839 = vtanh.f32 %v485_v26  ;;  %v544_v53 = vrot.slane %v485_v26, 7 }
 0xb1c   :  { %v840_v27 = vpop.eup %839 }
 0xb1d   :  { %488 = vrot.lane.b32.xlu1 %v840_v27, %s1018_s5 }
 0xb8f   :  { %v489_v28 = vpop.permute.xlu1 %488 }
 0xb90   :  { %v491_v29 = vmul.f32 %v489_v28, %v468_v18 }
 0xb92   :  { %v493_v30 = vrot.slane %v491_v29, 4  ;;  %v712_v31 = vsel %vm711_vm10, %v710_v0, %v491_v29  ;;  %vm717_vm10 = vcmask 1046528  }
 0xb94   :  { %494 = vrot.lane.b32.xlu2 %v493_v30, %s1019_s9 }
 0xbee   :  { %v495_v32 = vpop.permute.xlu2 %494 }
 0xbef   :  { %788 = vmatmul.msk.f32.vlgmr.msrb.gmra.mxu2 %vm141_vm1, %v495_v32 }
 0xc72   :  { %v515_v33 = vpop.f32.mrf.mxu2 }
 0xc73   :  { %v519_v34 = vrot.slane %v515_v33, 3 }
 0xc75   :  { %v521_v35 = vadd.f32 %v519_v34, %v1085_v10 }
 0xc77   :  { %v789_v36 = vmul.f32 -1.442695, %v521_v35 }
 0xc79   :  { %841 = vpow2.f32 %v789_v36 }
 0xc7f   :  { %v842_v38 = vpop.eup %841 }
 0xc80   :  { %v525_v39 = vadd.f32 1.0, %v842_v38 }
 0xc82   :  { %843 = vrcp.f32 %v525_v39  ;;  %v537_v43 = vand.u32 2147483648, %v525_v39  ;;  %v535_v45 = vand.u32 2147483647, %v525_v39  ;;  %vm531_vm12 = vweird.f32 %v525_v39 }
 0xc84   :  { %v538_v46 = vor.u32 1.1754944e-38, %v537_v43  ;;  %vm536_vm14 = vcmp.eq.f32.partialorder %v535_v45, 8.507059e+37 }
 0xc88   :  { %v844_v40 = vpop.eup %843 }
 0xc89   :  { %v527_v41 = vmul.f32 %v844_v40, %v525_v39  ;;  %vm532_vm11 = vweird.f32 %v844_v40 }
 0xc8a   :  { %vm533_vm13 = vmor %vm531_vm12, %vm532_vm11 }
 0xc8b   :  { %v528_v42 = vsub.f32 1.0, %v527_v41 }
 0xc8d   :  { %v529_v44 = vmul.f32 %v844_v40, %v528_v42 }
 0xc8f   :  { %v530_v37 = vadd.f32 %v844_v40, %v529_v44 }
 0xc91   :  { %v534_v47 = vsel %vm533_vm13, %v844_v40, %v530_v37 }
 0xc92   :  { %v539_v48 = vsel %vm536_vm14, %v538_v46, %v534_v47 }
 0xc93   :  { %v541_v49 = vmul.f32 2.0, %v539_v48  ;;  %v546_v54 = vmul.f32 %v544_v53, %v539_v48 }
 0xc95   :  { %v790_v50 = vadd.f32 -1.0, %v541_v49 }
 0xc97   :  { %548 = vrot.lane.b32.xlu0 %v790_v50, %s1018_s5 }
 0xd09   :  { %v549_v51 = vpop.permute.xlu0 %548 }
 0xd0a   :  { %v551_v52 = vmul.f32 %v549_v51, %v539_v48 }
 0xd0c   :  { %553 = vrot.lane.b32.xlu1 %v551_v52, %s1019_s9 }
 0xd7e   :  { %v554_v55 = vpop.permute.xlu1 %553 }
 0xd7f   :  { %v556_v56 = vadd.f32 %v554_v55, %v546_v54  ;;  %v722_v54 = vld [vmem:[#allocation10 + $0x18] sm:$0xff]  ;;  %v721_v55 = vld [vmem:[#allocation10 + $0x10] sm:$0xff] }
 0xd80   :  { %744 = vmatpush.msra.mxu1 %v722_v54 }
 0xd81   :  { %845 = vtanh.f32 %v556_v56  ;;  %v615_v20 = vrot.slane %v556_v56, 7  ;;  %v720_v56 = vld [vmem:[#allocation10 + $0x8] sm:$0xff] }
 0xd82   :  { %745 = vmatpush.msra.mxu1 %v721_v55 }
 0xd84   :  { %746 = vmatpush.msra.mxu1 %v720_v56 }
 0xd87   :  { %v846_v57 = vpop.eup %845 }
 0xd88   :  { %559 = vrot.lane.b32.xlu2 %v846_v57, %s1018_s5  ;;  %v719_v57 = vld [vmem:[#allocation10] sm:$0xff] }
 0xd89   :  { %747 = vmatpush.msra.mxu1 %v719_v57 }
 0xde2   :  { %v560_v58 = vpop.permute.xlu2 %559 }
 0xde3   :  { %v562_v59 = vmul.f32 %v560_v58, %v539_v48 }
 0xde5   :  { %v564_v60 = vrot.slane %v562_v59, 5  ;;  %v714_v61 = vsel %vm713_vm15, %v712_v31, %v562_v59 }
 0xde7   :  { %565 = vrot.lane.b32.xlu0 %v564_v60, %s1019_s9 }
 0xe59   :  { %v566_v62 = vpop.permute.xlu0 %565 }
 0xe5a   :  { %791 = vmatmul.msk.f32.vlgmr.msrb.gmra.mxu3 %vm141_vm1, %v566_v62  ;;  %v810_v62 = vld [vmem:[%s1156_s7] ss:$0 sm:$0xff] }
 0xedd   :  { %v586_v63 = vpop.f32.mrf.mxu3 }
 0xede   :  { %v590_v0 = vrot.slane %v586_v63, 2 }
 0xee0   :  { %v592_v1 = vadd.f32 %v590_v0, %v1085_v10 }
 0xee2   :  { %v792_v2 = vmul.f32 -1.442695, %v592_v1 }
 0xee4   :  { %847 = vpow2.f32 %v792_v2 }
 0xeea   :  { %v848_v3 = vpop.eup %847 }
 0xeeb   :  { %v596_v4 = vadd.f32 1.0, %v848_v3 }
 0xeed   :  { %849 = vrcp.f32 %v596_v4  ;;  %v608_v8 = vand.u32 2147483648, %v596_v4  ;;  %v606_v11 = vand.u32 2147483647, %v596_v4  ;;  %vm602_vm2 = vweird.f32 %v596_v4 }
 0xeef   :  { %v609_v13 = vor.u32 1.1754944e-38, %v608_v8  ;;  %vm607_vm4 = vcmp.eq.f32.partialorder %v606_v11, 8.507059e+37 }
 0xef3   :  { %v850_v5 = vpop.eup %849 }
 0xef4   :  { %v598_v6 = vmul.f32 %v850_v5, %v596_v4  ;;  %vm603_vm0 = vweird.f32 %v850_v5 }
 0xef5   :  { %vm604_vm3 = vmor %vm602_vm2, %vm603_vm0 }
 0xef6   :  { %v599_v7 = vsub.f32 1.0, %v598_v6 }
 0xef8   :  { %v600_v9 = vmul.f32 %v850_v5, %v599_v7 }
 0xefa   :  { %v601_v12 = vadd.f32 %v850_v5, %v600_v9 }
 0xefc   :  { %v605_v14 = vsel %vm604_vm3, %v850_v5, %v601_v12 }
 0xefd   :  { %v610_v15 = vsel %vm607_vm4, %v609_v13, %v605_v14 }
 0xefe   :  { %v612_v16 = vmul.f32 2.0, %v610_v15  ;;  %v617_v21 = vmul.f32 %v615_v20, %v610_v15 }
 0xf00   :  { %v793_v17 = vadd.f32 -1.0, %v612_v16 }
 0xf02   :  { %619 = vrot.lane.b32.xlu1 %v793_v17, %s1018_s5 }
 0xf74   :  { %v620_v18 = vpop.permute.xlu1 %619 }
 0xf75   :  { %v622_v19 = vmul.f32 %v620_v18, %v610_v15 }
 0xf77   :  { %624 = vrot.lane.b32.xlu2 %v622_v19, %s1019_s9 }
 0xfd1   :  { %v625_v22 = vpop.permute.xlu2 %624 }
 0xfd2   :  { %v627_v23 = vadd.f32 %v625_v22, %v617_v21 }
 0xfd4   :  { %851 = vtanh.f32 %v627_v23  ;;  %v686_v49 = vrot.slane %v627_v23, 7 }
 0xfda   :  { %v852_v24 = vpop.eup %851 }
 0xfdb   :  { %630 = vrot.lane.b32.xlu0 %v852_v24, %s1018_s5 }
0x104d   :  { %v631_v25 = vpop.permute.xlu0 %630 }
0x104e   :  { %v633_v26 = vmul.f32 %v631_v25, %v610_v15 }
0x1050   :  { %v635_v27 = vrot.slane %v633_v26, 6  ;;  %v716_v28 = vsel %vm715_vm5, %v714_v61, %v633_v26 }
0x1052   :  { %636 = vrot.lane.b32.xlu1 %v635_v27, %s1019_s9 }
0x10c4   :  { %v637_v29 = vpop.permute.xlu1 %636 }
0x10c5   :  { %794 = vmatmul.msk.f32.vlgmr.msra.gmra.mxu0 %vm141_vm1, %v637_v29 }
0x1142   :  { %v657_v30 = vpop.f32.mrf.mxu0 }
0x1143   :  { %v661_v31 = vrot.slane %v657_v30, 1 }
0x1145   :  { %v663_v32 = vadd.f32 %v661_v31, %v1085_v10 }
0x1147   :  { %v795_v33 = vmul.f32 -1.442695, %v663_v32 }
0x1149   :  { %853 = vpow2.f32 %v795_v33 }
0x114f   :  { %v854_v34 = vpop.eup %853 }
0x1150   :  { %v667_v35 = vadd.f32 1.0, %v854_v34 }
0x1152   :  { %855 = vrcp.f32 %v667_v35  ;;  %v679_v40 = vand.u32 2147483648, %v667_v35  ;;  %v677_v42 = vand.u32 2147483647, %v667_v35  ;;  %vm673_vm7 = vweird.f32 %v667_v35 }
0x1154   :  { %v680_v44 = vor.u32 1.1754944e-38, %v679_v40  ;;  %vm678_vm9 = vcmp.eq.f32.partialorder %v677_v42, 8.507059e+37 }
0x1158   :  { %v856_v36 = vpop.eup %855 }
0x1159   :  { %v669_v38 = vmul.f32 %v856_v36, %v667_v35  ;;  %vm674_vm6 = vweird.f32 %v856_v36 }
0x115a   :  { %vm675_vm8 = vmor %vm673_vm7, %vm674_vm6 }
0x115b   :  { %v670_v39 = vsub.f32 1.0, %v669_v38 }
0x115d   :  { %v671_v41 = vmul.f32 %v856_v36, %v670_v39 }
0x115f   :  { %v672_v43 = vadd.f32 %v856_v36, %v671_v41 }
0x1161   :  { %v676_v45 = vsel %vm675_vm8, %v856_v36, %v672_v43 }
0x1162   :  { %v681_v37 = vsel %vm678_vm9, %v680_v44, %v676_v45 }
0x1163   :  { %v683_v10 = vmul.f32 2.0, %v681_v37  ;;  %v688_v50 = vmul.f32 %v686_v49, %v681_v37 }
0x1165   :  { %v796_v46 = vadd.f32 -1.0, %v683_v10 }
0x1167   :  { %690 = vrot.lane.b32.xlu2 %v796_v46, %s1018_s5 }
0x11c1   :  { %v691_v47 = vpop.permute.xlu2 %690 }
0x11c2   :  { %v693_v48 = vmul.f32 %v691_v47, %v681_v37 }
0x11c4   :  { %695 = vrot.lane.b32.xlu0 %v693_v48, %s1019_s9 }
0x1236   :  { %v696_v51 = vpop.permute.xlu0 %695 }
0x1237   :  { %v698_v52 = vadd.f32 %v696_v51, %v688_v50 }
0x1239   :  { %857 = vtanh.f32 %v698_v52 }
0x123f   :  { %v858_v53 = vpop.eup %857 }
0x1240   :  { %701 = vrot.lane.b32.xlu1 %v858_v53, %s1018_s5 }
0x12b2   :  { %v702_v58 = vpop.permute.xlu1 %701 }
0x12b3   :  { %v704_v59 = vmul.f32 %v702_v58, %v681_v37 }
0x12b5   :  { %v718_v60 = vsel %vm717_vm10, %v716_v28, %v704_v59 }
0x12b6   :  { %728 = vrot.lane.b32.xlu2 %v718_v60, %s1019_s9 }
0x1310   :  { %v729_v61 = vpop.permute.xlu2 %728 }
0x1311   :  { %797 = vmatmul.msk.f32.vlgmr.msra.gmra.mxu1 %vm141_vm1, %v729_v61 }
0x138e   :  { %v749_v63 = vpop.f32.mrf.mxu1 }
0x138f   :  { %v750_v0 = vadd.f32 %v810_v62, %v749_v63 }
0x1391   :  { %752 = vst [vmem:[#allocation11] sm:$0xff] %v750_v0 }
0x1392   :  { %763 = dma.vmem_to_hbm [thread:$0]  %s759_s12, 128, %s761_s15, [#allocation4]  }
0x1393   :  { %1009 = dma.done.wait [#allocation4], 128  }
0x1394   :  { %1010 = vsyncadd [#allocation4], 4294967168 }
0x1395   :  { %768 = vsyncpa [#allocation3], 1 }
0x1396   :  { %769 = vsyncpa [#allocation6], 1 }
0x1397   :  { %770 = vsyncpa [#allocation9], 1 }
0x1398   :  { %771 = vsyncpa [#allocation4], 1 }

</bundles_post_ra>
